<compile_context>
chip_gen: v7x
topology: tpu7x:2x2x1
jax: 0.10.0
libtpu: 0.0.40
codegen_flags: <defaults>
</compile_context>

<pallas_src>
import jax
import jax.numpy as jnp
from jax.experimental import pallas as pl
from jax.experimental.pallas import tpu as pltpu

_LANES = 1024      # lane-dense last dim (multiple of 128)
_MAX_TILE_ROWS = 512  # 512*1024*4B = 2 MiB per f32 buffer; 6 buffers = 12 MiB


def _mul_kernel(z_ref, x_ref, o_ref):
    # Hot path: elementwise multiply on the VPU.
    o_ref[...] = z_ref[...] * x_ref[...]


def noise_z_forward(z, x):
    """out = z * x with NumPy/PyTorch broadcasting, computed in Pallas."""
    out_shape = jnp.broadcast_shapes(z.shape, x.shape)
    out_dtype = jnp.result_type(z.dtype, x.dtype)

    # Broadcasting / reshaping is pure layout plumbing done in the wrapper.
    zb = jnp.broadcast_to(z, out_shape).astype(out_dtype).reshape(-1)
    xb = jnp.broadcast_to(x, out_shape).astype(out_dtype).reshape(-1)
    n = zb.size

    rows = pl.cdiv(n, _LANES)
    # Full-dim block when small (always legal); otherwise 512-row tiles
    # (multiple of 8, so (8,128)-aligned).
    tile_rows = rows if rows <= _MAX_TILE_ROWS else _MAX_TILE_ROWS
    padded_rows = pl.cdiv(rows, tile_rows) * tile_rows
    padded_n = padded_rows * _LANES
    if padded_n != n:
        pad = padded_n - n
        zb = jnp.pad(zb, (0, pad))
        xb = jnp.pad(xb, (0, pad))

    z2 = zb.reshape(padded_rows, _LANES)
    x2 = xb.reshape(padded_rows, _LANES)

    out2 = pl.pallas_call(
        _mul_kernel,
        out_shape=jax.ShapeDtypeStruct((padded_rows, _LANES), out_dtype),
        grid=(padded_rows // tile_rows,),
        in_specs=[
            pl.BlockSpec((tile_rows, _LANES), lambda i: (i, 0)),
            pl.BlockSpec((tile_rows, _LANES), lambda i: (i, 0)),
        ],
        out_specs=pl.BlockSpec((tile_rows, _LANES), lambda i: (i, 0)),
        compiler_params=pltpu.CompilerParams(
            dimension_semantics=("parallel",)
        ),
    )(z2, x2)

    return out2.reshape(-1)[:n].reshape(out_shape)


if __name__ == "__main__":
    batch_size = 2
    feat = 128  # fixed by the module definition (torch.randn(batchSize, 128))

    key = jax.random.PRNGKey(0)
    k_z, k_x = jax.random.split(key)

    # Deterministic "parameter" init (stands in for torch.randn init).
    Z = jax.random.normal(k_z, (batch_size, feat), dtype=jnp.float32)
    x = jax.random.normal(k_x, (batch_size, feat), dtype=jnp.float32)

    out = noise_z_forward(Z, x)
    out = jax.block_until_ready(out)

    # Reference check against plain JAX elementwise multiply.
    ref = Z * x
    assert out.shape == (batch_size, feat)
    assert jnp.allclose(out, ref, atol=1e-6, rtol=1e-6)

    # Broadcasting case NoiseZ.forward also accepts (input of shape (128,)).
    x1 = jax.random.normal(jax.random.PRNGKey(1), (feat,), dtype=jnp.float32)
    out_b = jax.block_until_ready(noise_z_forward(Z, x1))
    assert jnp.allclose(out_b, Z * x1, atol=1e-6, rtol=1e-6)

    print("KERNEL_OK")
</pallas_src>

<mosaic_0001>
module attributes {stable_mosaic.version = 11 : i64} {
  func.func @_mul_kernel(%arg0: i32, %arg1: memref<1x1024xf32, #tpu.memory_space<vmem>>, %arg2: memref<1x1024xf32, #tpu.memory_space<vmem>>, %arg3: memref<1x1024xf32, #tpu.memory_space<vmem>>) attributes {dimension_semantics = [#tpu.dimension_semantics<parallel>], iteration_bounds = array<i64: 1>, scalar_prefetch = 0 : i64, scratch_operands = 0 : i64, tpu.core_type = #tpu.core_type<tc>, window_params = [{transform_indices = @transform_0, window_bounds = array<i64: 1, 1024>}, {transform_indices = @transform_1, window_bounds = array<i64: 1, 1024>}, {transform_indices = @transform_2, window_bounds = array<i64: 1, 1024>}]} {
    %c0 = arith.constant 0 : index
    %c0_0 = arith.constant 0 : index
    %0 = vector.load %arg1[%c0, %c0_0] : memref<1x1024xf32, #tpu.memory_space<vmem>>, vector<1x1024xf32>
    %c0_1 = arith.constant 0 : index
    %c0_2 = arith.constant 0 : index
    %1 = vector.load %arg2[%c0_1, %c0_2] : memref<1x1024xf32, #tpu.memory_space<vmem>>, vector<1x1024xf32>
    %2 = arith.mulf %0, %1 : vector<1x1024xf32>
    %c0_3 = arith.constant 0 : index
    %c0_4 = arith.constant 0 : index
    %3 = vector.load %arg3[%c0_3, %c0_4] : memref<1x1024xf32, #tpu.memory_space<vmem>>, vector<1x1024xf32>
    tpu.vector_store %arg3[%c0_3, %c0_4], %2 {strides = array<i32>} : memref<1x1024xf32, #tpu.memory_space<vmem>>, vector<1x1024xf32>,
    return
  }
  func.func @transform_0(%arg0: i32) -> (i32, i32) {
    %c0_i32 = arith.constant 0 : i32
    %c0_i32_0 = arith.constant 0 : i32
    return %arg0, %c0_i32 : i32, i32
  }
  func.func @transform_1(%arg0: i32) -> (i32, i32) {
    %c0_i32 = arith.constant 0 : i32
    %c0_i32_0 = arith.constant 0 : i32
    return %arg0, %c0_i32 : i32, i32
  }
  func.func @transform_2(%arg0: i32) -> (i32, i32) {
    %c0_i32 = arith.constant 0 : i32
    %c0_i32_0 = arith.constant 0 : i32
    return %arg0, %c0_i32 : i32, i32
  }
}

</mosaic_0001>

<bundles_post_ra>
// kernel: tpu_custom_call.1
= control target key start
LH: loop header
LB: loop body
LE: loop exit
PB: predicated region body
PF: predicated region fallthrough
CT: control target
= control target key end

     0   :  { %7 = vsyncpa [#allocation3], 0  ;;  %s185_s0 = inlined_call_operand.hbm [shape: f32[1,1024], index: 0, kind: input, shape index: {}]   ;;  %s186_s1 = inlined_call_operand.hbm [shape: f32[1,1024], index: 1, kind: input, shape index: {}]   ;;  %s187_s2 = inlined_call_operand.hbm [shape: f32[1,1024], index: 2, kind: output, shape index: {}]  }
   0x1   :  { %8 = vsyncpa [#allocation6], 0 }
   0x2   :  { %9 = vsyncpa [#allocation4], 0  ;;  %s131_s9 = smov [#allocation2]   ;;  %s132_s11 = smov [#allocation5]  }
   0x3   :  { %s16_s10 = sshll.u32 %s131_s9, 4  ;;  %s26_s12 = sshll.u32 %s132_s11, 4  ;;  %s17_s10 = int_to_ptr.vmem [resolvable:$true] %s16_s10  ;;  %s27_s12 = int_to_ptr.vmem [resolvable:$true] %s26_s12 }
   0x4   :  { %s59_s15 = scalar_lea.hbm %s185_s0, 128 }
   0x5   :  { %p60_p0 = scmp.ne.s32.totalorder %s185_s0, %s59_s15  ;;  %p63_p1 = scmp.lt.u32.totalorder %s59_s15, %s185_s0 }
   0x7   :  { %p65_p2 = pnand %p63_p1, %p60_p0 }
   0x9   :  { %68 = shalt.err (!%p65_p2)
}
   0xa   :  { %s69_s20 = scalar_lea.vmem %s17_s10, 128  ;;  %p74_p4 = scmp.lt.s32.totalorder %s17_s10, %s17_s10 }
   0xb   :  { %p70_p3 = scmp.ne.s32.totalorder %s17_s10, %s69_s20  ;;  %p75_p5 = scmp.lt.s32.totalorder %s69_s20, %s69_s20 }
   0xd   :  { %p76_p6 = por %p75_p5, %p74_p4 }
   0xf   :  { %p77_p7 = pnand %p76_p6, %p70_p3 }
  0x11   :  { %80 = shalt.err (!%p77_p7)
}
  0x12   :  { %19 = dma.hbm_to_vmem [thread:$0]  %s185_s0, 128, %s17_s10, [#allocation3]  }
  0x13   :  { %s81_s25 = scalar_lea.hbm %s186_s1, 128 }
  0x14   :  { %p82_p8 = scmp.ne.s32.totalorder %s186_s1, %s81_s25  ;;  %p85_p9 = scmp.lt.u32.totalorder %s81_s25, %s186_s1 }
  0x16   :  { %p87_p10 = pnand %p85_p9, %p82_p8 }
  0x18   :  { %90 = shalt.err (!%p87_p10)
}
  0x19   :  { %s91_s30 = scalar_lea.vmem %s27_s12, 128  ;;  %p96_p12 = scmp.lt.s32.totalorder %s27_s12, %s27_s12 }
  0x1a   :  { %p92_p11 = scmp.ne.s32.totalorder %s27_s12, %s91_s30  ;;  %p97_p13 = scmp.lt.s32.totalorder %s91_s30, %s91_s30 }
  0x1c   :  { %p98_p0 = por %p97_p13, %p96_p12 }
  0x1e   :  { %p99_p1 = pnand %p98_p0, %p92_p11 }
  0x20   :  { %102 = shalt.err (!%p99_p1)
}
  0x21   :  { %29 = dma.hbm_to_vmem [thread:$0]  %s186_s1, 128, %s27_s12, [#allocation6]  }
  0x22   :  { %125 = dma.done.wait [#allocation3], 128  }
  0x23   :  { %126 = vsyncadd [#allocation3], 4294967168 }
  0x24   :  { %127 = dma.done.wait [#allocation6], 128  }
  0x25   :  { %128 = vsyncadd [#allocation6], 4294967168  ;;  %s133_s4 = smov [#allocation7]   ;;  %v36_v0 = vld [vmem:[#allocation2] sm:$0xff]  ;;  %v37_v1 = vld [vmem:[#allocation5] sm:$0xff] }
  0x26   :  { %s46_s5 = sshll.u32 %s133_s4, 4  ;;  %v38_v2 = vmul.f32 %v37_v1, %v36_v0  ;;  %s47_s5 = int_to_ptr.vmem [resolvable:$true] %s46_s5 }
  0x27   :  { %s103_s6 = scalar_lea.vmem %s47_s5, 128  ;;  %p108_p3 = scmp.lt.s32.totalorder %s47_s5, %s47_s5 }
  0x28   :  { %39 = vst [vmem:[#allocation7] sm:$0xff] %v38_v2  ;;  %p104_p2 = scmp.ne.s32.totalorder %s47_s5, %s103_s6  ;;  %p109_p4 = scmp.lt.s32.totalorder %s103_s6, %s103_s6 }
  0x2a   :  { %p110_p5 = por %p109_p4, %p108_p3 }
  0x2c   :  { %p111_p6 = pnand %p110_p5, %p104_p2 }
  0x2e   :  { %114 = shalt.err (!%p111_p6)
}
  0x2f   :  { %s115_s8 = scalar_lea.hbm %s187_s2, 128 }
  0x30   :  { %p116_p7 = scmp.ne.s32.totalorder %s187_s2, %s115_s8  ;;  %p119_p8 = scmp.lt.u32.totalorder %s115_s8, %s187_s2 }
  0x32   :  { %p121_p9 = pnand %p119_p8, %p116_p7 }
  0x34   :  { %124 = shalt.err (!%p121_p9)
}
  0x35   :  { %49 = dma.vmem_to_hbm [thread:$0]  %s47_s5, 128, %s187_s2, [#allocation4]  }
  0x36   :  { %129 = dma.done.wait [#allocation4], 128  }
  0x37   :  { %130 = vsyncadd [#allocation4], 4294967168 }
  0x38   :  { %53 = vsyncpa [#allocation3], 1 }
  0x39   :  { %54 = vsyncpa [#allocation6], 1 }
  0x3a   :  { %55 = vsyncpa [#allocation4], 1 }

</bundles_post_ra>
